<compile_context>
chip_gen: v7x
topology: tpu7x:2x2x1
jax: 0.10.0
libtpu: 0.0.40
codegen_flags: <defaults>
</compile_context>

<pallas_src>
import jax
import jax.numpy as jnp
from jax.experimental import pallas as pl
from jax.experimental.pallas import tpu as pltpu


def _round_up(x, m):
    return (x + m - 1) // m * m


def _seqwise_noacc_kernel(x_ref, w_ref, b_ref, o_ref):
    # x: (tm, H_in_p), w: (H_in_p, tn), b: (1, tn) f32, o: (tm, tn)
    o_ref[...] = (jnp.dot(x_ref[...], w_ref[...],
                          preferred_element_type=jnp.float32)
                  + b_ref[...]).astype(o_ref.dtype)


def _seqwise_acc_kernel(x_ref, w_ref, b_ref, o_ref, acc_ref):
    # x: (tm, tk), w: (tk, tn), b: (1, tn) f32, o: (tm, tn), acc: (tm, tn) f32
    k = pl.program_id(2)

    @pl.when(k == 0)
    def _():
        # Bias-initialise the accumulator: saves a full-tile add + extra
        # vld/vst pass in the epilogue (last K step is on the critical path).
        acc_ref[...] = jnp.broadcast_to(b_ref[...], acc_ref.shape)

    acc_ref[...] += jnp.dot(x_ref[...], w_ref[...],
                            preferred_element_type=jnp.float32)

    @pl.when(k == pl.num_programs(2) - 1)
    def _():
        o_ref[...] = acc_ref[...].astype(o_ref.dtype)


def sequence_wise_linear(x, weight, bias, *, compute_dtype=None,
                         use_pallas=None):
    """y = SequenceWise(nn.Linear)(x): (T, N, H_in) -> (T, N, H_out).

    x:      (T, N, H_in)
    weight: (H_in, H_out)   (transposed vs. torch's (H_out, H_in) layout)
    bias:   (H_out,)
    compute_dtype: optional cast for x/weight (e.g. jnp.bfloat16 on v6e/v7x:
                   ~2x MXU rate, half the DMA); accumulation is always f32.
    use_pallas: force/skip the Pallas path (None = auto by problem size).
    """
    t, n, h_in = x.shape
    h_out = weight.shape[1]
    rows = t * n
    out_dtype = x.dtype

    if use_pallas is None:
        # Tiny problems: Pallas launch + grid-step overhead dwarfs the matmul.
        use_pallas = rows * h_in * h_out >= (1 << 20)

    def _xla_fallback():
        y = (x.reshape(rows, h_in).astype(jnp.float32)
             @ weight.astype(jnp.float32) + bias.astype(jnp.float32))
        return y.astype(out_dtype).reshape(t, n, h_out)

    if not use_pallas:
        return _xla_fallback()

    cdt = jnp.dtype(compute_dtype) if compute_dtype is not None else jnp.dtype(x.dtype)
    in_bytes = cdt.itemsize
    out_bytes = jnp.dtype(out_dtype).itemsize

    # --- Per-generation VMEM budget --------------------------------------
    try:
        vmem_cap = int(pltpu.get_tpu_info().vmem_capacity_bytes)
    except Exception:
        vmem_cap = 64 << 20                     # conservative (v7x-sized)
    budget = int(vmem_cap * 3 // 4)             # leave DMA / compiler headroom

    # --- Lane-dense padded feature dims -----------------------------------
    h_in_p = _round_up(h_in, 128)
    h_out_p = _round_up(h_out, 128)
    rows_16 = _round_up(rows, 16)

    def vmem_need(tm, tn, tk, k_tiles):
        need = (2 * tm * tk * in_bytes          # x tile   (double-buffered)
                + 2 * tk * tn * in_bytes        # w tile
                + 2 * tn * 4                    # bias tile (f32)
                + 2 * tm * tn * out_bytes)      # out tile
        if k_tiles > 1:
            need += tm * tn * 4                 # resident f32 accumulator
        return need

    def fits(tm, tn, tk, k_tiles):
        return vmem_need(tm, tn, tk, k_tiles) + (2 << 20) <= budget

    # Output tiles: multiples of 128 that divide H_out_p (no extra padding).
    tn_cands = []
    if h_out_p <= 2048:
        tn_cands.append(h_out_p)
    tn_cands += [d for d in (2048, 1024, 512, 256, 128)
                 if d < h_out_p and h_out_p % d == 0]
    tn_cands = list(dict.fromkeys(tn_cands)) or [128]

    # Row tiles: multiples of 16; prefer exact divisors of T*N (no padding).
    tm_cap = min(2048, rows_16)
    tm_set = {v for v in (2048, 1024, 512, 256, 128, 64, 32, 16) if v <= tm_cap}
    if rows_16 <= 2048:
        tm_set.add(rows_16)
    tm_set |= {d for d in range(16, tm_cap + 1, 16) if rows % d == 0}
    tm_cands = sorted(tm_set, reverse=True) or [16]

    def pick_tm(tn, tk, k_tiles):
        fitting = [v for v in tm_cands if fits(v, tn, tk, k_tiles)]
        if not fitting:
            return None
        tm_fit = fitting[0]
        # Prefer a divisor of rows within 2x of the best fit: avoids the
        # wrapper-side jnp.pad / output slice (extra full-activation HBM passes).
        div = [v for v in fitting if 2 * v > tm_fit and rows % v == 0]
        return max(div) if div else tm_fit

    plan = None
    # --- Path A: K collapsed, weight VMEM-resident, no accumulator --------
    for tn in tn_cands:
        if 2 * h_in_p * tn * in_bytes > budget // 2:
            continue                            # keep room for x / out tiles
        tm = pick_tm(tn, h_in_p, 1)
        if tm is not None:
            plan = ("noacc", tm, tn, h_in_p)
            break

    # --- Path B: K-tiled with f32 accumulator (very large H_in fallback) --
    if plan is None:
        tk_cands = [d for d in (1024, 512, 256, 128) if h_in_p % d == 0] or [128]
        for tn in tn_cands:
            for tk in tk_cands:
                tm = pick_tm(tn, tk, h_in_p // tk)
                if tm is not None:
                    plan = ("acc", tm, tn, tk)
                    break
            if plan is not None:
                break

    if plan is None:
        # Pathological shape for this VMEM budget: let XLA handle it.
        return _xla_fallback()

    mode, tm, tn, tk = plan
    rows_p = _round_up(rows, tm)
    row_tiles = rows_p // tm
    n_tiles = h_out_p // tn
    k_tiles = h_in_p // tk

    # v7x megacore: guarantee >= 2 iterations on a parallel grid axis.
    if row_tiles * n_tiles == 1 and rows >= 32:
        tm = max(16, _round_up((rows + 1) // 2, 16))
        rows_p = _round_up(rows, tm)
        row_tiles = rows_p // tm

    # --- Prepare operands (cast / pad only when actually needed) ----------
    x2d = x.reshape(rows, h_in)
    if x2d.dtype != cdt:
        x2d = x2d.astype(cdt)
    w = weight if weight.dtype == cdt else weight.astype(cdt)
    b2d = bias.astype(jnp.float32).reshape(1, h_out)

    if rows_p != rows or h_in_p != h_in:
        x2d = jnp.pad(x2d, ((0, rows_p - rows), (0, h_in_p - h_in)))
    if h_in_p != h_in or h_out_p != h_out:
        w = jnp.pad(w, ((0, h_in_p - h_in), (0, h_out_p - h_out)))
    if h_out_p != h_out:
        b2d = jnp.pad(b2d, ((0, 0), (0, h_out_p - h_out)))

    x_hbm_bytes = rows_p * h_in_p * in_bytes
    w_hbm_bytes = h_in_p * h_out_p * in_bytes
    o_hbm_bytes = rows_p * h_out_p * out_bytes

    if mode == "noacc":
        kernel = _seqwise_noacc_kernel
        scratch_shapes = []
        dims = ("parallel", "parallel")
        # Pallas skips the DMA when a block index repeats on consecutive grid
        # steps: put the axis the weight does NOT depend on innermost when that
        # is cheaper (weight streamed from HBM exactly once), else keep the
        # activation single-pass.
        weight_resident = (n_tiles == 1 or
                           n_tiles * x_hbm_bytes + w_hbm_bytes
                           <= x_hbm_bytes + row_tiles * w_hbm_bytes)
        if weight_resident:
            grid = (n_tiles, row_tiles)
            in_specs = [
                pl.BlockSpec((tm, h_in_p), lambda j, i: (i, 0)),
                pl.BlockSpec((h_in_p, tn), lambda j, i: (0, j)),
                pl.BlockSpec((1, tn), lambda j, i: (0, j)),
            ]
            out_specs = pl.BlockSpec((tm, tn), lambda j, i: (i, j))
            bytes_accessed = n_tiles * x_hbm_bytes + w_hbm_bytes + o_hbm_bytes
        else:
            grid = (row_tiles, n_tiles)
            in_specs = [
                pl.BlockSpec((tm, h_in_p), lambda i, j: (i, 0)),
                pl.BlockSpec((h_in_p, tn), lambda i, j: (0, j)),
                pl.BlockSpec((1, tn), lambda i, j: (0, j)),
            ]
            out_specs = pl.BlockSpec((tm, tn), lambda i, j: (i, j))
            bytes_accessed = x_hbm_bytes + row_tiles * w_hbm_bytes + o_hbm_bytes
    else:
        kernel = _seqwise_acc_kernel
        scratch_shapes = [pltpu.VMEM((tm, tn), jnp.float32)]
        dims = ("parallel", "parallel", "arbitrary")
        grid = (row_tiles, n_tiles, k_tiles)
        in_specs = [
            pl.BlockSpec((tm, tk), lambda i, j, k: (i, k)),
            pl.BlockSpec((tk, tn), lambda i, j, k: (k, j)),
            pl.BlockSpec((1, tn), lambda i, j, k: (0, j)),
        ]
        out_specs = pl.BlockSpec((tm, tn), lambda i, j, k: (i, j))
        bytes_accessed = (n_tiles * x_hbm_bytes + row_tiles * w_hbm_bytes
                          + o_hbm_bytes)

    vmem_limit = int(min(vmem_cap,
                         max(vmem_need(tm, tn, tk, k_tiles) + (8 << 20),
                             32 << 20)))

    cost = pl.CostEstimate(
        flops=2 * rows_p * h_in_p * h_out_p,
        bytes_accessed=int(bytes_accessed + h_out_p * 4),
        transcendentals=0,
    )

    out2d = pl.pallas_call(
        kernel,
        out_shape=jax.ShapeDtypeStruct((rows_p, h_out_p), out_dtype),
        grid_spec=pltpu.PrefetchScalarGridSpec(
            num_scalar_prefetch=0,
            grid=grid,
            in_specs=in_specs,
            out_specs=out_specs,
            scratch_shapes=scratch_shapes,
        ),
        compiler_params=pltpu.CompilerParams(
            dimension_semantics=dims,
            vmem_limit_bytes=vmem_limit,
        ),
        cost_estimate=cost,
    )(x2d, w, b2d)

    if rows_p != rows or h_out_p != h_out:
        out2d = out2d[:rows, :h_out]
    return out2d.reshape(t, n, h_out)


if __name__ == "__main__":
    # Small shapes consistent with the module: seq T=8, batch N=2, hidden=32.
    T, N, H_IN, H_OUT = 8, 2, 32, 32

    key = jax.random.PRNGKey(0)
    kx, kw, kb = jax.random.split(key, 3)

    x = jax.random.normal(kx, (T, N, H_IN), dtype=jnp.float32)
    bound = 1.0 / (H_IN ** 0.5)
    weight = jax.random.uniform(kw, (H_IN, H_OUT), jnp.float32, -bound, bound)
    bias = jax.random.uniform(kb, (H_OUT,), jnp.float32, -bound, bound)

    ref = (x.reshape(T * N, H_IN) @ weight + bias).reshape(T, N, H_OUT)

    # 1) f32 path (force the Pallas kernel even at demo size).
    out = sequence_wise_linear(x, weight, bias, use_pallas=True)
    out = jax.block_until_ready(out)
    assert out.shape == (T, N, H_OUT)
    assert jnp.allclose(out, ref, atol=1e-5, rtol=1e-5)

    # 2) bf16 compute path (f32 accumulation) — looser tolerance.
    out_bf16 = sequence_wise_linear(x, weight, bias, use_pallas=True,
                                    compute_dtype=jnp.bfloat16)
    out_bf16 = jax.block_until_ready(out_bf16)
    assert out_bf16.shape == (T, N, H_OUT)
    assert jnp.allclose(out_bf16, ref, atol=2e-2, rtol=2e-2)

    print("KERNEL_OK")
</pallas_src>

<mosaic_0001>
module attributes {stable_mosaic.version = 11 : i64} {
  func.func @_seqwise_noacc_kernel(%arg0: i32, %arg1: i32, %arg2: memref<16x128xf32, #tpu.memory_space<vmem>>, %arg3: memref<128x128xf32, #tpu.memory_space<vmem>>, %arg4: memref<1x128xf32, #tpu.memory_space<vmem>>, %arg5: memref<16x128xf32, #tpu.memory_space<vmem>>) attributes {dimension_semantics = [#tpu.dimension_semantics<parallel>, #tpu.dimension_semantics<parallel>], iteration_bounds = array<i64: 1, 1>, scalar_prefetch = 0 : i64, scratch_operands = 0 : i64, tpu.core_type = #tpu.core_type<tc>, window_params = [{transform_indices = @transform_0, window_bounds = array<i64: 16, 128>}, {transform_indices = @transform_1, window_bounds = array<i64: 128, 128>}, {transform_indices = @transform_2, window_bounds = array<i64: 1, 128>}, {transform_indices = @transform_3, window_bounds = array<i64: 16, 128>}]} {
    %c0 = arith.constant 0 : index
    %c0_0 = arith.constant 0 : index
    %0 = vector.load %arg2[%c0, %c0_0] : memref<16x128xf32, #tpu.memory_space<vmem>>, vector<16x128xf32>
    %c0_1 = arith.constant 0 : index
    %c0_2 = arith.constant 0 : index
    %1 = vector.load %arg3[%c0_1, %c0_2] : memref<128x128xf32, #tpu.memory_space<vmem>>, vector<128x128xf32>
    %cst = arith.constant dense<0.000000e+00> : vector<16x128xf32>
    %2 = tpu.matmul %0, %1, %cst {dimension_numbers = #tpu.dot_dimension_numbers<[1], [0], [0], [1], [0, 0, 1, 1], [], []>} : vector<16x128xf32>, vector<128x128xf32>, vector<16x128xf32> -> vector<16x128xf32>
    %c0_3 = arith.constant 0 : index
    %c0_4 = arith.constant 0 : index
    %3 = vector.load %arg4[%c0_3, %c0_4] : memref<1x128xf32, #tpu.memory_space<vmem>>, vector<1x128xf32>
    %4 = vector.broadcast %3 : vector<1x128xf32> to vector<16x128xf32>
    %5 = arith.addf %2, %4 : vector<16x128xf32>
    %c0_5 = arith.constant 0 : index
    %c0_6 = arith.constant 0 : index
    %6 = vector.load %arg5[%c0_5, %c0_6] : memref<16x128xf32, #tpu.memory_space<vmem>>, vector<16x128xf32>
    tpu.vector_store %arg5[%c0_5, %c0_6], %5 {strides = array<i32>} : memref<16x128xf32, #tpu.memory_space<vmem>>, vector<16x128xf32>,
    return
  }
  func.func @transform_0(%arg0: i32, %arg1: i32) -> (i32, i32) {
    %c0_i32 = arith.constant 0 : i32
    %c0_i32_0 = arith.constant 0 : i32
    return %arg1, %c0_i32 : i32, i32
  }
  func.func @transform_1(%arg0: i32, %arg1: i32) -> (i32, i32) {
    %c0_i32 = arith.constant 0 : i32
    %c0_i32_0 = arith.constant 0 : i32
    return %c0_i32, %arg0 : i32, i32
  }
  func.func @transform_2(%arg0: i32, %arg1: i32) -> (i32, i32) {
    %c0_i32 = arith.constant 0 : i32
    %c0_i32_0 = arith.constant 0 : i32
    return %c0_i32, %arg0 : i32, i32
  }
  func.func @transform_3(%arg0: i32, %arg1: i32) -> (i32, i32) {
    %c0_i32 = arith.constant 0 : i32
    return %arg1, %arg0 : i32, i32
  }
}

</mosaic_0001>

<bundles_post_ra>
// kernel: tpu_custom_call.1
= control target key start
LH: loop header
LB: loop body
LE: loop exit
PB: predicated region body
PF: predicated region fallthrough
CT: control target
= control target key end

     0   :  { %8 = vsyncpa [#allocation3], 0  ;;  %s399_s0 = inlined_call_operand.hbm [shape: f32[16,128], index: 0, kind: input, shape index: {}]   ;;  %s400_s1 = inlined_call_operand.hbm [shape: f32[128,128], index: 1, kind: input, shape index: {}]   ;;  %s401_s2 = inlined_call_operand.vmem [shape: f32[1,128], index: 2, kind: input, shape index: {}]   ;;  %s402_s3 = inlined_call_operand.hbm [shape: f32[16,128], index: 3, kind: output, shape index: {}]  }
   0x1   :  { %9 = vsyncpa [#allocation6], 0 }
   0x2   :  { %10 = vsyncpa [#allocation4], 0  ;;  %s326_s12 = smov [#allocation2]   ;;  %s254_s16 = scalar_lea.hbm %s399_s0, 256 }
   0x3   :  { %s16_s13 = sshll.u32 %s326_s12, 4  ;;  %p255_p0 = scmp.ne.s32.totalorder %s399_s0, %s254_s16  ;;  %s17_s13 = int_to_ptr.vmem [resolvable:$true] %s16_s13 }
   0x4   :  { %p258_p1 = scmp.lt.u32.totalorder %s254_s16, %s399_s0 }
   0x6   :  { %p260_p2 = pnand %p258_p1, %p255_p0 }
   0x8   :  { %263 = shalt.err (!%p260_p2)
}
   0x9   :  { %s264_s21 = scalar_lea.vmem %s17_s13, 256  ;;  %p269_p4 = scmp.lt.s32.totalorder %s17_s13, %s17_s13 }
   0xa   :  { %p265_p3 = scmp.ne.s32.totalorder %s17_s13, %s264_s21  ;;  %p270_p5 = scmp.lt.s32.totalorder %s264_s21, %s264_s21 }
   0xc   :  { %p271_p6 = por %p270_p5, %p269_p4 }
   0xe   :  { %p272_p7 = pnand %p271_p6, %p265_p3 }
  0x10   :  { %275 = shalt.err (!%p272_p7)
}
  0x11   :  { %s327_s22 = smov 128   ;;  %s328_s23 = smov 8  }
  0x12   :  { %22 = dma.hbm_to_vmem [thread:$0]  %s399_s0, 256, %s17_s13, [#allocation3], %s327_s22, %s327_s22, %s328_s23  }
  0x13   :  { %s329_s26 = smov [#allocation5]   ;;  %s276_s30 = scalar_lea.hbm %s400_s1, 2048 }
  0x14   :  { %s28_s27 = sshll.u32 %s329_s26, 4  ;;  %p277_p8 = scmp.ne.s32.totalorder %s400_s1, %s276_s30  ;;  %s29_s27 = int_to_ptr.vmem [resolvable:$true] %s28_s27 }
  0x15   :  { %p280_p9 = scmp.lt.u32.totalorder %s276_s30, %s400_s1 }
  0x17   :  { %p282_p10 = pnand %p280_p9, %p277_p8 }
  0x19   :  { %285 = shalt.err (!%p282_p10)
}
  0x1a   :  { %s286_s8 = scalar_lea.vmem %s29_s27, 2048  ;;  %p291_p12 = scmp.lt.s32.totalorder %s29_s27, %s29_s27 }
  0x1b   :  { %p287_p11 = scmp.ne.s32.totalorder %s29_s27, %s286_s8  ;;  %p292_p13 = scmp.lt.s32.totalorder %s286_s8, %s286_s8 }
  0x1d   :  { %p293_p0 = por %p292_p13, %p291_p12 }
  0x1f   :  { %p294_p1 = pnand %p293_p0, %p287_p11 }
  0x21   :  { %297 = shalt.err (!%p294_p1)
}
  0x22   :  { %34 = dma.hbm_to_vmem [thread:$0]  %s400_s1, 2048, %s29_s27, [#allocation6], %s327_s22, %s327_s22, %s328_s23  }
  0x23   :  { %320 = dma.done.wait [#allocation3], 256  }
  0x24   :  { %321 = vsyncadd [#allocation3], 4294967040 }
  0x25   :  { %322 = dma.done.wait [#allocation6], 2048  }
  0x26   :  { %323 = vsyncadd [#allocation6], 4294965248  ;;  %v45_v0 = vld [vmem:[#allocation5] sm:$0xff]  ;;  %v46_v1 = vld [vmem:[#allocation5 + $0x8] sm:$0xff]  ;;  %s330_s11 = smov [#allocation7]  }
  0x27   :  { %v47_v2 = vld [vmem:[#allocation5 + $0x10] sm:$0xff]  ;;  %v217_v3 = vpack.c.bf16 %v46_v1, %v45_v0  ;;  %v48_v4 = vld [vmem:[#allocation5 + $0x18] sm:$0xff]  ;;  %v49_v6 = vld [vmem:[#allocation5 + $0x20] sm:$0xff]  ;;  %s150_s12 = sshll.u32 %s330_s11, 4  ;;  %s151_s12 = int_to_ptr.vmem [resolvable:$true] %s150_s12 }
  0x28   :  { %v221_v5 = vpack.c.bf16 %v48_v4, %v47_v2  ;;  %v50_v7 = vld [vmem:[#allocation5 + $0x28] sm:$0xff]  ;;  %v43_v9 = vld [vmem:[#allocation2] sm:$0xff]  ;;  %v52_v11 = vld [vmem:[#allocation5 + $0x38] sm:$0xff]  ;;  %s298_s13 = scalar_lea.vmem %s151_s12, 256  ;;  %p303_p3 = scmp.lt.s32.totalorder %s151_s12, %s151_s12 }
  0x29   :  { %218 = vmatprep.subr.bf16.mxu0 %v217_v3  ;;  %v225_v8 = vpack.c.bf16 %v50_v7, %v49_v6  ;;  %v51_v10 = vld [vmem:[#allocation5 + $0x30] sm:$0xff]  ;;  %214 = vmatprep.mubr.f32.mxu0 %v43_v9  ;;  %v53_v13 = vld [vmem:[#allocation5 + $0x40] sm:$0xff]  ;;  %v54_v14 = vld [vmem:[#allocation5 + $0x48] sm:$0xff]  ;;  %p299_p2 = scmp.ne.s32.totalorder %s151_s12, %s298_s13  ;;  %p304_p4 = scmp.lt.s32.totalorder %s298_s13, %s298_s13 }
  0x2a   :  { %220 = vmatpush3.bf16.msra.mxu0 %v217_v3  ;;  %v229_v12 = vpack.c.bf16 %v52_v11, %v51_v10  ;;  %v233_v15 = vpack.c.bf16 %v54_v14, %v53_v13  ;;  %v55_v16 = vld [vmem:[#allocation5 + $0x50] sm:$0xff]  ;;  %v56_v17 = vld [vmem:[#allocation5 + $0x58] sm:$0xff]  ;;  %v57_v19 = vld [vmem:[#allocation5 + $0x60] sm:$0xff] }
  0x2b   :  { %222 = vmatprep.subr.bf16.mxu0 %v221_v5  ;;  %v237_v18 = vpack.c.bf16 %v56_v17, %v55_v16  ;;  %v58_v20 = vld [vmem:[#allocation5 + $0x68] sm:$0xff]  ;;  %v59_v22 = vld [vmem:[#allocation5 + $0x70] sm:$0xff]  ;;  %v60_v23 = vld [vmem:[#allocation5 + $0x78] sm:$0xff]  ;;  %p305_p5 = por %p304_p4, %p303_p3 }
  0x2c   :  { %v241_v21 = vpack.c.bf16 %v58_v20, %v57_v19  ;;  %v245_v24 = vpack.c.bf16 %v60_v23, %v59_v22  ;;  %v44_v25 = vld [vmem:[#allocation2 + $0x8] sm:$0xff]  ;;  %v163_v26 = vld [vmem:[%s401_s2] ss:$0 sm:$0xff] }
  0x2d   :  { %p306_p6 = pnand %p305_p5, %p299_p2 }
  0x2e   :  { %224 = vmatpush3.bf16.msra.mxu0 %v221_v5 }
  0x2f   :  { %226 = vmatprep.subr.bf16.mxu0 %v225_v8 }
  0x32   :  { %228 = vmatpush3.bf16.msra.mxu0 %v225_v8 }
  0x33   :  { %230 = vmatprep.subr.bf16.mxu0 %v229_v12 }
  0x36   :  { %232 = vmatpush3.bf16.msra.mxu0 %v229_v12 }
  0x37   :  { %234 = vmatprep.subr.bf16.mxu0 %v233_v15 }
  0x3a   :  { %236 = vmatpush3.bf16.msra.mxu0 %v233_v15 }
  0x3b   :  { %238 = vmatprep.subr.bf16.mxu0 %v237_v18 }
  0x3e   :  { %240 = vmatpush3.bf16.msra.mxu0 %v237_v18 }
  0x3f   :  { %242 = vmatprep.subr.bf16.mxu0 %v241_v21 }
  0x42   :  { %244 = vmatpush3.bf16.msra.mxu0 %v241_v21 }
  0x43   :  { %246 = vmatprep.subr.bf16.mxu0 %v245_v24 }
  0x46   :  { %248 = vmatpush3.bf16.msra.mxu0 %v245_v24 }
  0x49   :  { %215 = vmatmul.mubr.f32.vlgmr.msra.gmra.mrb[0].mxu0 %v44_v25 }
 0x11c   :  { %v216_v27 = vpop.f32.mrb[0].mxu0 }
 0x11d   :  { %v140_v28 = vadd.f32 %v216_v27, %v163_v26  ;;  %v134_v29 = vpop.f32.mrb[1].mxu0 }
 0x11e   :  { %v135_v30 = vadd.f32 %v163_v26, %v134_v29 }
 0x11f   :  { %144 = vst [vmem:[#allocation7 + $0x8] sm:$0xff] %v140_v28 }
 0x120   :  { %143 = vst [vmem:[#allocation7] sm:$0xff] %v135_v30 }
 0x121   :  { %309 = shalt.err (!%p306_p6)
}
 0x122   :  { %s310_s2 = scalar_lea.hbm %s402_s3, 256 }
 0x123   :  { %p311_p7 = scmp.ne.s32.totalorder %s402_s3, %s310_s2  ;;  %p314_p8 = scmp.lt.u32.totalorder %s310_s2, %s402_s3 }
 0x125   :  { %p316_p9 = pnand %p314_p8, %p311_p7 }
 0x127   :  { %319 = shalt.err (!%p316_p9)
}
 0x128   :  { %156 = dma.vmem_to_hbm [thread:$0]  %s151_s12, 256, %s402_s3, [#allocation4], %s327_s22, %s327_s22, %s328_s23  }
 0x129   :  { %324 = dma.done.wait [#allocation4], 256  }
 0x12a   :  { %325 = vsyncadd [#allocation4], 4294967040 }
 0x12b   :  { %160 = vsyncpa [#allocation3], 1 }
 0x12c   :  { %161 = vsyncpa [#allocation6], 1 }
 0x12d   :  { %162 = vsyncpa [#allocation4], 1 }

</bundles_post_ra>
